<compile_context>
chip_gen: v7x
topology: tpu7x:2x2x1
jax: 0.10.0
libtpu: 0.0.40
codegen_flags: <defaults>
</compile_context>

<pallas_src>
import functools
import math

import jax
import jax.numpy as jnp
from jax import lax
from jax.experimental import pallas as pl
from jax.experimental.pallas import tpu as pltpu

IN_DIM = 7
HID = 40
OUT_DIM = 1
_LANE = 128
_CHUNK = 512          # lanes per inner step; keeps per-chunk h1/h2 in vregs


def _cdiv(a, b):
    return -(-a // b)


def _round_up(x, m):
    return _cdiv(x, m) * m


def _mlp_kernel(x_ref, w1_ref, b1_ref, w2_ref, b2_ref, w3_ref, o_ref):
    """One grid step: all chunks of one batch tile.

    x_ref : (ncpt, 8, CHUNK)  features on sublanes, samples on lanes
    w1    : (40, 8)   (zero-padded 8th input column)
    b1/b2/w3 : (40, 1) columns, w2 : (40, 40)
    o_ref : (ncpt, 1, CHUNK)
    """
    w1 = w1_ref[...]
    b1 = b1_ref[...]
    w2 = w2_ref[...]
    b2 = b2_ref[...]
    w3 = w3_ref[...]
    n_chunks = x_ref.shape[0]

    def body(c, carry):
        x = x_ref[c]                                                    # (8, CH)
        # Layer 1: (40,8) @ (8,CH) on the MXU, f32 accumulation; ReLU on VPU.
        h1 = jnp.dot(w1, x, preferred_element_type=jnp.float32) + b1
        h1 = jnp.maximum(h1, 0.0)
        # Layer 2: (40,40) @ (40,CH).
        h2 = jnp.dot(w2, h1, preferred_element_type=jnp.float32) + b2
        h2 = jnp.maximum(h2, 0.0)
        # Layer 3 (40 -> 1, no bias): broadcast-multiply + sublane reduction
        # instead of an M=1 MXU dot (keeps the epilogue off the MXU path).
        z = jnp.sum(w3 * h2, axis=0, keepdims=True)                     # (1, CH)
        # sigmoid(z) = 0.5 * (1 + tanh(z/2)) -> one EUP push instead of two.
        o_ref[c] = 0.5 * (1.0 + jnp.tanh(0.5 * z))
        return carry

    if n_chunks == 1:
        body(0, 0)
    else:
        lax.fori_loop(0, n_chunks, body, 0, unroll=min(n_chunks, 8))


def _plan_tiles(batch, tile_b):
    """Pick (chunk, chunks_per_tile, n_grid_steps) for `batch` samples."""
    chunk = min(_CHUNK, _round_up(batch, _LANE))      # always a multiple of 128
    c_total = _cdiv(batch, chunk)
    cap_chunks = max(1, max(_LANE, int(tile_b)) // chunk)
    n_steps = _cdiv(c_total, cap_chunks)
    if c_total >= 2:
        n_steps = max(n_steps, 2)     # keep v7x's second TensorCore busy
    ncpt = _cdiv(c_total, n_steps)    # chunks per grid tile
    n_steps = _cdiv(c_total, ncpt)
    return chunk, ncpt, n_steps


def _vmem_limit_bytes(chunk, ncpt, x_itemsize):
    # Double-buffered x tile + (sublane-padded) output tile, resident params
    # (lane-padded, double-buffered), per-chunk activations, plus headroom.
    io = 2 * (ncpt * 8 * chunk * x_itemsize) + 2 * (ncpt * 8 * chunk * 4)
    params = 2 * 5 * HID * _LANE * 4
    acts = 4 * chunk * (2 * HID + 2 * 8 + 2)
    need = io + params + acts + (4 << 20)
    return int(min(max(need, 16 << 20), 64 << 20))


def mlp_forward(x, w1, b1, w2, b2, w3, *, tile_b=32768):
    """Forward pass matching the PyTorch module.

    x  : (B, 7)  float32 (bf16 inputs also accepted; dots accumulate in f32)
    w1 : (40, 7), b1 : (40,)   -- PyTorch nn.Linear layouts
    w2 : (40, 40), b2 : (40,)
    w3 : (1, 40)               -- final layer, bias=False
    returns (B, 1) float32.
    """
    B = x.shape[0]
    chunk, ncpt, n_steps = _plan_tiles(B, tile_b)
    c_pad = n_steps * ncpt
    b_pad = c_pad * chunk

    # Repack x into the chunk-major, sublane/lane-aligned slab:
    #   x3[n, f, l] = x[n*chunk + l, f]  (zero padded on both axes).
    # TODO(synk): produce x in this (or a (7, B) transposed) layout upstream to
    # avoid this one extra HBM relayout pass before an HBM-bound kernel.
    x_pad = jnp.pad(x, ((0, b_pad - B), (0, 8 - IN_DIM)))
    x3 = x_pad.reshape(c_pad, chunk, 8).transpose(0, 2, 1)       # (c_pad, 8, chunk)

    w1p = jnp.pad(w1.astype(jnp.float32), ((0, 0), (0, 8 - IN_DIM)))  # (40, 8)
    b1c = b1.reshape(HID, 1).astype(jnp.float32)
    w2f = w2.astype(jnp.float32)
    b2c = b2.reshape(HID, 1).astype(jnp.float32)
    w3c = w3.reshape(HID, 1).astype(jnp.float32)

    out3 = pl.pallas_call(
        _mlp_kernel,
        out_shape=jax.ShapeDtypeStruct((c_pad, 1, chunk), jnp.float32),
        grid_spec=pltpu.PrefetchScalarGridSpec(
            num_scalar_prefetch=0,
            grid=(n_steps,),
            in_specs=[
                pl.BlockSpec((ncpt, 8, chunk), lambda i: (i, 0, 0)),   # x tile
                pl.BlockSpec((HID, 8), lambda i: (0, 0)),              # W1 (resident)
                pl.BlockSpec((HID, 1), lambda i: (0, 0)),              # b1 column
                pl.BlockSpec((HID, HID), lambda i: (0, 0)),            # W2 (resident)
                pl.BlockSpec((HID, 1), lambda i: (0, 0)),              # b2 column
                pl.BlockSpec((HID, 1), lambda i: (0, 0)),              # w3 column
            ],
            out_specs=pl.BlockSpec((ncpt, 1, chunk), lambda i: (i, 0, 0)),
        ),
        compiler_params=pltpu.CompilerParams(
            dimension_semantics=("parallel",),
            vmem_limit_bytes=_vmem_limit_bytes(chunk, ncpt, x.dtype.itemsize),
        ),
    )(x3, w1p, b1c, w2f, b2c, w3c)

    # Drop batch padding; return in the PyTorch output layout (B, 1).
    return out3.reshape(b_pad)[:B].reshape(B, OUT_DIM)


def _init_linear(key, fan_in, fan_out, bias=True):
    """PyTorch-style uniform(-1/sqrt(fan_in), 1/sqrt(fan_in)) init."""
    bound = 1.0 / math.sqrt(fan_in)
    kw, kb = jax.random.split(key)
    w = jax.random.uniform(kw, (fan_out, fan_in), jnp.float32, -bound, bound)
    if bias:
        b = jax.random.uniform(kb, (fan_out,), jnp.float32, -bound, bound)
        return w, b
    return w, None


def _reference(x, w1, b1, w2, b2, w3):
    h1 = jnp.maximum(x @ w1.T + b1, 0.0)
    h2 = jnp.maximum(h1 @ w2.T + b2, 0.0)
    return jax.nn.sigmoid(h2 @ w3.T)


if __name__ == "__main__":
    key = jax.random.PRNGKey(0)
    k_x1, k_x2, k1, k2, k3 = jax.random.split(key, 5)

    w1, b1 = _init_linear(k1, IN_DIM, HID)
    w2, b2 = _init_linear(k2, HID, HID)
    w3, _ = _init_linear(k3, HID, OUT_DIM, bias=False)

    # Small batch, deliberately NOT a multiple of the chunk (exercises padding,
    # single-tile path).
    x_small = jax.random.normal(k_x1, (200, IN_DIM), jnp.float32)
    out_small = jax.block_until_ready(mlp_forward(x_small, w1, b1, w2, b2, w3))
    assert out_small.shape == (200, OUT_DIM)
    assert jnp.allclose(out_small, _reference(x_small, w1, b1, w2, b2, w3),
                        atol=1e-5, rtol=1e-5)

    # Slightly larger batch: multi-chunk inner loop + 2-step grid (v7x megacore
    # sharding path), still small enough to run instantly.
    x_big = jax.random.normal(k_x2, (1500, IN_DIM), jnp.float32)
    out_big = jax.block_until_ready(mlp_forward(x_big, w1, b1, w2, b2, w3))
    assert out_big.shape == (1500, OUT_DIM)
    assert jnp.allclose(out_big, _reference(x_big, w1, b1, w2, b2, w3),
                        atol=1e-5, rtol=1e-5)

    print("KERNEL_OK")
</pallas_src>

<mosaic_0001>
module attributes {stable_mosaic.version = 11 : i64} {
  func.func @_mlp_kernel(%arg0: i32, %arg1: memref<1x8x256xf32, #tpu.memory_space<vmem>>, %arg2: memref<40x8xf32, #tpu.memory_space<vmem>>, %arg3: memref<40x1xf32, #tpu.memory_space<vmem>>, %arg4: memref<40x40xf32, #tpu.memory_space<vmem>>, %arg5: memref<40x1xf32, #tpu.memory_space<vmem>>, %arg6: memref<40x1xf32, #tpu.memory_space<vmem>>, %arg7: memref<1x1x256xf32, #tpu.memory_space<vmem>>) attributes {dimension_semantics = [#tpu.dimension_semantics<parallel>], iteration_bounds = array<i64: 1>, scalar_prefetch = 0 : i64, scratch_operands = 0 : i64, tpu.core_type = #tpu.core_type<tc>, window_params = [{transform_indices = @transform_0, window_bounds = array<i64: 1, 8, 256>}, {pipeline_mode = #tpu.pipeline_mode<synchronous>, transform_indices = @transform_1, window_bounds = array<i64: 40, 8>}, {pipeline_mode = #tpu.pipeline_mode<synchronous>, transform_indices = @transform_2, window_bounds = array<i64: 40, 1>}, {pipeline_mode = #tpu.pipeline_mode<synchronous>, transform_indices = @transform_3, window_bounds = array<i64: 40, 40>}, {pipeline_mode = #tpu.pipeline_mode<synchronous>, transform_indices = @transform_4, window_bounds = array<i64: 40, 1>}, {pipeline_mode = #tpu.pipeline_mode<synchronous>, transform_indices = @transform_5, window_bounds = array<i64: 40, 1>}, {transform_indices = @transform_6, window_bounds = array<i64: 1, 1, 256>}]} {
    %c0 = arith.constant 0 : index
    %c0_0 = arith.constant 0 : index
    %0 = vector.load %arg2[%c0, %c0_0] : memref<40x8xf32, #tpu.memory_space<vmem>>, vector<40x8xf32>
    %c0_1 = arith.constant 0 : index
    %c0_2 = arith.constant 0 : index
    %1 = vector.load %arg3[%c0_1, %c0_2] : memref<40x1xf32, #tpu.memory_space<vmem>>, vector<40x1xf32>
    %c0_3 = arith.constant 0 : index
    %c0_4 = arith.constant 0 : index
    %2 = vector.load %arg4[%c0_3, %c0_4] : memref<40x40xf32, #tpu.memory_space<vmem>>, vector<40x40xf32>
    %c0_5 = arith.constant 0 : index
    %c0_6 = arith.constant 0 : index
    %3 = vector.load %arg5[%c0_5, %c0_6] : memref<40x1xf32, #tpu.memory_space<vmem>>, vector<40x1xf32>
    %c0_7 = arith.constant 0 : index
    %c0_8 = arith.constant 0 : index
    %4 = vector.load %arg6[%c0_7, %c0_8] : memref<40x1xf32, #tpu.memory_space<vmem>>, vector<40x1xf32>
    %c0_9 = arith.constant 0 : index
    %c0_10 = arith.constant 0 : index
    %c0_11 = arith.constant 0 : index
    %5 = vector.load %arg1[%c0_9, %c0_10, %c0_11] : memref<1x8x256xf32, #tpu.memory_space<vmem>>, vector<1x8x256xf32>
    %6 = vector.shape_cast %5 : vector<1x8x256xf32> to vector<8x256xf32>
    %cst = arith.constant dense<0.000000e+00> : vector<40x256xf32>
    %7 = tpu.matmul %0, %6, %cst {dimension_numbers = #tpu.dot_dimension_numbers<[1], [0], [0], [1], [0, 0, 1, 1], [], []>} : vector<40x8xf32>, vector<8x256xf32>, vector<40x256xf32> -> vector<40x256xf32>
    %8 = vector.broadcast %1 : vector<40x1xf32> to vector<40x256xf32>
    %9 = arith.addf %7, %8 : vector<40x256xf32>
    %cst_12 = arith.constant 0.000000e+00 : f32
    %10 = vector.broadcast %cst_12 : f32 to vector<40x256xf32>
    %11 = arith.maximumf %9, %10 : vector<40x256xf32>
    %cst_13 = arith.constant dense<0.000000e+00> : vector<40x256xf32>
    %12 = tpu.matmul %2, %11, %cst_13 {dimension_numbers = #tpu.dot_dimension_numbers<[1], [0], [0], [1], [0, 0, 1, 1], [], []>} : vector<40x40xf32>, vector<40x256xf32>, vector<40x256xf32> -> vector<40x256xf32>
    %13 = vector.broadcast %3 : vector<40x1xf32> to vector<40x256xf32>
    %14 = arith.addf %12, %13 : vector<40x256xf32>
    %cst_14 = arith.constant 0.000000e+00 : f32
    %15 = vector.broadcast %cst_14 : f32 to vector<40x256xf32>
    %16 = arith.maximumf %14, %15 : vector<40x256xf32>
    %17 = vector.broadcast %4 : vector<40x1xf32> to vector<40x256xf32>
    %18 = arith.mulf %17, %16 : vector<40x256xf32>
    %cst_15 = arith.constant dense<0.000000e+00> : vector<256xf32>
    %19 = vector.multi_reduction <add>, %18, %cst_15 [0] : vector<40x256xf32> to vector<256xf32>
    %20 = vector.shape_cast %19 : vector<256xf32> to vector<1x256xf32>
    %cst_16 = arith.constant 5.000000e-01 : f32
    %21 = vector.broadcast %cst_16 : f32 to vector<1x256xf32>
    %22 = arith.mulf %21, %20 : vector<1x256xf32>
    %23 = math.tanh %22 : vector<1x256xf32>
    %cst_17 = arith.constant 1.000000e+00 : f32
    %24 = vector.broadcast %cst_17 : f32 to vector<1x256xf32>
    %25 = arith.addf %24, %23 : vector<1x256xf32>
    %cst_18 = arith.constant 5.000000e-01 : f32
    %26 = vector.broadcast %cst_18 : f32 to vector<1x256xf32>
    %27 = arith.mulf %26, %25 : vector<1x256xf32>
    %c0_19 = arith.constant 0 : index
    %c0_20 = arith.constant 0 : index
    %c0_21 = arith.constant 0 : index
    %28 = vector.load %arg7[%c0_19, %c0_20, %c0_21] : memref<1x1x256xf32, #tpu.memory_space<vmem>>, vector<1x1x256xf32>
    %29 = vector.shape_cast %28 : vector<1x1x256xf32> to vector<1x256xf32>
    %30 = vector.shape_cast %27 : vector<1x256xf32> to vector<1x1x256xf32>
    tpu.vector_store %arg7[%c0_19, %c0_20, %c0_21], %30 {strides = array<i32>} : memref<1x1x256xf32, #tpu.memory_space<vmem>>, vector<1x1x256xf32>,
    return
  }
  func.func @transform_0(%arg0: i32) -> (i32, i32, i32) {
    %c0_i32 = arith.constant 0 : i32
    %c0_i32_0 = arith.constant 0 : i32
    %c0_i32_1 = arith.constant 0 : i32
    return %arg0, %c0_i32, %c0_i32_0 : i32, i32, i32
  }
  func.func @transform_1(%arg0: i32) -> (i32, i32) {
    %c0_i32 = arith.constant 0 : i32
    %c0_i32_0 = arith.constant 0 : i32
    %c0_i32_1 = arith.constant 0 : i32
    return %c0_i32, %c0_i32_0 : i32, i32
  }
  func.func @transform_2(%arg0: i32) -> (i32, i32) {
    %c0_i32 = arith.constant 0 : i32
    %c0_i32_0 = arith.constant 0 : i32
    %c0_i32_1 = arith.constant 0 : i32
    return %c0_i32, %c0_i32_0 : i32, i32
  }
  func.func @transform_3(%arg0: i32) -> (i32, i32) {
    %c0_i32 = arith.constant 0 : i32
    %c0_i32_0 = arith.constant 0 : i32
    %c0_i32_1 = arith.constant 0 : i32
    return %c0_i32, %c0_i32_0 : i32, i32
  }
  func.func @transform_4(%arg0: i32) -> (i32, i32) {
    %c0_i32 = arith.constant 0 : i32
    %c0_i32_0 = arith.constant 0 : i32
    %c0_i32_1 = arith.constant 0 : i32
    return %c0_i32, %c0_i32_0 : i32, i32
  }
  func.func @transform_5(%arg0: i32) -> (i32, i32) {
    %c0_i32 = arith.constant 0 : i32
    %c0_i32_0 = arith.constant 0 : i32
    %c0_i32_1 = arith.constant 0 : i32
    return %c0_i32, %c0_i32_0 : i32, i32
  }
  func.func @transform_6(%arg0: i32) -> (i32, i32, i32) {
    %c0_i32 = arith.constant 0 : i32
    %c0_i32_0 = arith.constant 0 : i32
    %c0_i32_1 = arith.constant 0 : i32
    return %arg0, %c0_i32, %c0_i32_0 : i32, i32, i32
  }
}

</mosaic_0001>

<bundles_post_ra>
// kernel: tpu_custom_call.1
= control target key start
LH: loop header
LB: loop body
LE: loop exit
PB: predicated region body
PF: predicated region fallthrough
CT: control target
= control target key end

     0   :  { %vm76_vm0 = vcmask 64512   ;;  %v501_v3 = vmov 0.0   ;;  %v502_v4 = vmov 0   ;;  %s648_s0 = inlined_call_operand.vmem [shape: f32[1,8,256], index: 0, kind: input, shape index: {}]   ;;  %s649_s1 = inlined_call_operand.vmem [shape: f32[40,8], index: 1, kind: input, shape index: {}]   ;;  %s650_s2 = inlined_call_operand.vmem [shape: f32[40,1], index: 2, kind: input, shape index: {}]   ;;  %s651_s3 = inlined_call_operand.vmem [shape: f32[40,40], index: 3, kind: input, shape index: {}]   ;;  %s652_s4 = inlined_call_operand.vmem [shape: f32[40,1], index: 4, kind: input, shape index: {}]   ;;  %s653_s5 = inlined_call_operand.vmem [shape: f32[40,1], index: 5, kind: input, shape index: {}]   ;;  %s654_s6 = inlined_call_operand.hbm [shape: f32[1,1,256], index: 6, kind: output, shape index: {}]  }
   0x1   :  { %v50_v0 = vld [vmem:[%s648_s0 + $0x8] sm:$0xff]  ;;  %v49_v1 = vld [vmem:[%s648_s0] sm:$0xff]  ;;  %156 = vmatprep.mubr.f32.mxu0 %v501_v3  ;;  %471 = vset.pattern.permute.xlu0 %v502_v4  ;;  %v31_v6 = vld [vmem:[%s650_s2 + $0x10] sm:$0xff] }
   0x2   :  { %v24_v2 = vld [vmem:[%s649_s1] sm:$0xff]  ;;  %92 = vmatprep.subr.mxu0 %v50_v0  ;;  %v25_v7 = vld [vmem:[%s649_s1 + $0x8] sm:$0xff]  ;;  %472 = vset.pattern.permute.xlu1 %v502_v4  ;;  %v32_v9 = vld [vmem:[%s650_s2 + $0x18] sm:$0xff] }
   0x3   :  { %93 = vmatpush1.msra.mxu0 %v49_v1  ;;  %v29_v5 = vld [vmem:[%s650_s2] sm:$0xff]  ;;  %v30_v8 = vld [vmem:[%s650_s2 + $0x8] sm:$0xff]  ;;  %63 = vperm.xlu1 %472, %v31_v6  }
   0x4   :  { %443 = vmatmul.mubr.msk.f32.vlgmr.msra.gmra.mrb[0].mxu0 %vm76_vm0, %v24_v2  ;;  %53 = vperm.xlu0 %471, %v29_v5  }
   0x5   :  { %162 = vmatprep.mubr.f32.mxu0 %v501_v3  ;;  %308 = vmatprep.mubr.f32.mxu1 %v501_v3 }
   0x8   :  { %444 = vmatmul.mubr.msk.f32.gmra.mrb[2].mxu0 %vm76_vm0, %v25_v7  ;;  %58 = vperm.xlu0 %471, %v30_v8  }
   0x9   :  { %11 = vsyncpa [#allocation3], 0  ;;  %168 = vmatprep.mubr.f32.mxu0 %v501_v3  ;;  %v26_v10 = vld [vmem:[%s649_s1 + $0x10] sm:$0xff]  ;;  %v33_v11 = vld [vmem:[%s650_s2 + $0x20] sm:$0xff]  ;;  %68 = vperm.xlu1 %472, %v32_v9   ;;  %vm222_vm1 = vcmask 326656  }
   0xa   :  { %v39_v12 = vld [vmem:[%s652_s4] sm:$0xff]  ;;  %v27_v13 = vld [vmem:[%s649_s1 + $0x18] sm:$0xff]  ;;  %v40_v14 = vld [vmem:[%s652_s4 + $0x8] sm:$0xff] }
   0xb   :  { %v41_v15 = vld [vmem:[%s652_s4 + $0x10] sm:$0xff]  ;;  %v28_v16 = vld [vmem:[%s649_s1 + $0x20] sm:$0xff]  ;;  %v42_v17 = vld [vmem:[%s652_s4 + $0x18] sm:$0xff] }
   0xc   :  { %445 = vmatmul.mubr.msk.f32.gmra.mrb[4].mxu0 %vm76_vm0, %v26_v10  ;;  %73 = vperm.xlu0 %471, %v33_v11   ;;  %v44_v18 = vld [vmem:[%s653_s5] sm:$0xff]  ;;  %v45_v19 = vld [vmem:[%s653_s5 + $0x8] sm:$0xff]  ;;  %v46_v21 = vld [vmem:[%s653_s5 + $0x10] sm:$0xff] }
   0xd   :  { %174 = vmatprep.mubr.f32.mxu0 %v501_v3  ;;  %199 = vperm.xlu1 %472, %v39_v12   ;;  %v43_v20 = vld [vmem:[%s652_s4 + $0x20] sm:$0xff]  ;;  %v47_v22 = vld [vmem:[%s653_s5 + $0x18] sm:$0xff]  ;;  %v35_v0 = vld [vmem:[%s651_s3 + $0x8] sm:$0xff] }
   0xe   :  { %v48_v23 = vld [vmem:[%s653_s5 + $0x20] sm:$0xff]  ;;  %v36_v1 = vld [vmem:[%s651_s3 + $0x10] sm:$0xff]  ;;  %v37_v2 = vld [vmem:[%s651_s3 + $0x18] sm:$0xff] }
   0xf   :  { %v34_v63 = vld [vmem:[%s651_s3] sm:$0xff] }
  0x10   :  { %446 = vmatmul.mubr.msk.f32.gmra.mrb[6].mxu0 %vm76_vm0, %v27_v13  ;;  %204 = vperm.xlu0 %471, %v40_v14   ;;  %v38_v4 = vld [vmem:[%s651_s3 + $0x20] sm:$0xff]  ;;  %s504_s3 = smov [#allocation2]  }
  0x11   :  { %180 = vmatprep.mubr.f32.mxu0 %v501_v3  ;;  %209 = vperm.xlu1 %472, %v41_v15   ;;  %s435_s21 = sshll.u32 %s504_s3, 4  ;;  %s436_s21 = int_to_ptr.vmem [resolvable:$true] %s435_s21 }
  0x12   :  { %s477_s2 = scalar_lea.vmem %s436_s21, 32  ;;  %p482_p1 = scmp.lt.s32.totalorder %s436_s21, %s436_s21 }
  0x13   :  { %p478_p0 = scmp.ne.s32.totalorder %s436_s21, %s477_s2  ;;  %p483_p2 = scmp.lt.s32.totalorder %s477_s2, %s477_s2 }
  0x14   :  { %447 = vmatmul.mubr.msk.f32.gmra.mrb[8].mxu0 %vm76_vm0, %v28_v16  ;;  %214 = vperm.xlu0 %471, %v42_v17  }
  0x15   :  { %302 = vmatprep.mubr.f32.mxu0 %v501_v3  ;;  %345 = vperm.xlu1 %472, %v44_v18   ;;  %p484_p3 = por %p483_p2, %p482_p1 }
  0x17   :  { %p485_p4 = pnand %p484_p3, %p478_p0 }
  0x18   :  { %350 = vperm.xlu0 %471, %v45_v19  }
  0x19   :  { %219 = vperm.xlu1 %472, %v43_v20  }
  0x1c   :  { %355 = vperm.xlu0 %471, %v46_v21  }
  0x1d   :  { %360 = vperm.xlu1 %472, %v47_v22  }
  0x20   :  { %365 = vperm.xlu0 %471, %v48_v23  }
  0x82   :  { %v64_v33 = vpop.permute.xlu1 %63 }
  0x83   :  { %v54_v24 = vpop.permute.xlu0 %53 }
  0x87   :  { %v59_v28 = vpop.permute.xlu0 %58 }
  0x88   :  { %v69_v44 = vpop.permute.xlu1 %68 }
  0x8b   :  { %v74_v55 = vpop.permute.xlu0 %73 }
  0x8c   :  { %v200_v5 = vpop.permute.xlu1 %199 }
  0x8f   :  { %v205_v6 = vpop.permute.xlu0 %204 }
  0x90   :  { %v210_v7 = vpop.permute.xlu1 %209 }
  0x93   :  { %v215_v8 = vpop.permute.xlu0 %214 }
  0x94   :  { %v346_v9 = vpop.permute.xlu1 %345 }
  0x97   :  { %v351_v16 = vpop.permute.xlu0 %350 }
  0xd7   :  { %v158_v25 = vpop.f32.mrb[0].mxu0 }
  0xd8   :  { %v160_v26 = vpop.f32.mrb[1].mxu0  ;;  %v159_v27 = vadd.f32 %v158_v25, %v54_v24 }
  0xd9   :  { %v161_v29 = vadd.f32 %v160_v26, %v54_v24 }
  0xda   :  { %v187_v35 = vmax.f32 %v159_v27, 0.0  ;;  %v220_v27 = vpop.permute.xlu1 %219 }
  0xdb   :  { %v164_v30 = vpop.f32.mrb[2].mxu0  ;;  %v188_v37 = vmax.f32 %v161_v29, 0.0 }
  0xdc   :  { %v165_v31 = vadd.f32 %v164_v30, %v59_v28  ;;  %v166_v32 = vpop.f32.mrb[3].mxu0 }
  0xdd   :  { %v167_v34 = vadd.f32 %v166_v32, %v59_v28 }
  0xde   :  { %v189_v36 = vmax.f32 %v165_v31, 0.0 }
  0xdf   :  { %v190_v38 = vmax.f32 %v167_v34, 0.0  ;;  %v170_v39 = vpop.f32.mrb[4].mxu0 }
  0xe0   :  { %v455_v40 = vpack.c.bf16 %v189_v36, %v187_v35  ;;  %v172_v41 = vpop.f32.mrb[5].mxu0  ;;  %v171_v43 = vadd.f32 %v170_v39, %v64_v33 }
  0xe1   :  { %v453_v42 = vpack.c.bf16 %v190_v38, %v188_v37  ;;  %v173_v45 = vadd.f32 %v172_v41, %v64_v33  ;;  %v356_v33 = vpop.permute.xlu0 %355 }
  0xe2   :  { %v191_v50 = vmax.f32 %v171_v43, 0.0 }
  0xe3   :  { %v176_v46 = vpop.f32.mrb[6].mxu0  ;;  %454 = vmatprep.subr.bf16.mxu0 %v453_v42  ;;  %461 = vmatprep.subr.bf16.mxu1 %v453_v42  ;;  %v192_v52 = vmax.f32 %v173_v45, 0.0 }
  0xe4   :  { %v177_v47 = vadd.f32 %v176_v46, %v69_v44  ;;  %v178_v48 = vpop.f32.mrb[7].mxu0  ;;  %456 = vmatpush1.bf16.msra.mxu0 %v455_v40  ;;  %464 = vmatpush1.bf16.msra.mxu1 %v455_v40 }
  0xe5   :  { %v179_v49 = vadd.f32 %v178_v48, %v69_v44  ;;  %v361_v44 = vpop.permute.xlu1 %360 }
  0xe6   :  { %v193_v51 = vmax.f32 %v177_v47, 0.0 }
  0xe7   :  { %v194_v53 = vmax.f32 %v179_v49, 0.0  ;;  %v182_v54 = vpop.f32.mrb[8].mxu0 }
  0xe8   :  { %v459_v56 = vpack.c.bf16 %v193_v51, %v191_v50  ;;  %v184_v57 = vpop.f32.mrb[9].mxu0  ;;  %v183_v60 = vadd.f32 %v182_v54, %v74_v55 }
  0xe9   :  { %v457_v58 = vpack.c.bf16 %v194_v53, %v192_v52  ;;  %v185_v59 = vadd.f32 %v184_v57, %v74_v55  ;;  %v366_v55 = vpop.permute.xlu0 %365 }
  0xea   :  { %v195_v62 = vmax.f32 %v183_v60, 0.0 }
  0xeb   :  { %v196_v61 = vmax.f32 %v185_v59, 0.0  ;;  %458 = vmatprep.subr.bf16.mxu0 %v457_v58  ;;  %462 = vmatprep.subr.bf16.mxu1 %v457_v58 }
  0xec   :  { %460 = vmatpush1.bf16.msra.mxu0 %v459_v56  ;;  %465 = vmatpush1.bf16.msra.mxu1 %v459_v56 }
  0xed   :  { %246 = vmatprep.subr.mxu0 %v196_v61  ;;  %463 = vmatprep.subr.mxu1 %v196_v61 }
  0xf0   :  { %247 = vmatpush1.msra.mxu0 %v195_v62  ;;  %466 = vmatpush1.msra.mxu1 %v195_v62 }
  0xf1   :  { %448 = vmatmul.mubr.msk.f32.vlgmr.msra.gmra.mrb[10].mxu0 %vm222_vm1, %v34_v63  ;;  %449 = vmatmul.mubr.msk.f32.vlgmr.msra.gmra.mrb[0].mxu1 %vm222_vm1, %v35_v0 }
  0xf2   :  { %314 = vmatprep.mubr.f32.mxu1 %v501_v3 }
  0xf5   :  { %450 = vmatmul.mubr.msk.f32.gmra.mrb[2].mxu1 %vm222_vm1, %v36_v1 }
  0xf6   :  { %320 = vmatprep.mubr.f32.mxu1 %v501_v3 }
  0xf9   :  { %451 = vmatmul.mubr.msk.f32.gmra.mrb[4].mxu1 %vm222_vm1, %v37_v2 }
  0xfa   :  { %326 = vmatprep.mubr.f32.mxu1 %v501_v3 }
  0xfd   :  { %452 = vmatmul.mubr.msk.f32.gmra.mrb[6].mxu1 %vm222_vm1, %v38_v4 }
 0x1c4   :  { %v304_v10 = vpop.f32.mrb[10].mxu0  ;;  %v310_v11 = vpop.f32.mrb[0].mxu1 }
 0x1c5   :  { %v305_v12 = vadd.f32 %v304_v10, %v200_v5  ;;  %v311_v13 = vadd.f32 %v310_v11, %v205_v6  ;;  %v306_v14 = vpop.f32.mrb[11].mxu0  ;;  %v312_v15 = vpop.f32.mrb[1].mxu1 }
 0x1c6   :  { %v307_v17 = vadd.f32 %v306_v14, %v200_v5  ;;  %v313_v18 = vadd.f32 %v312_v15, %v205_v6  ;;  %v412_v15 = vlaneseq }
 0x1c7   :  { %v333_v3 = vmax.f32 %v305_v12, 0.0  ;;  %v335_v19 = vmax.f32 %v311_v13, 0.0  ;;  %v503_v13 = vmov 1966171168  }
 0x1c8   :  { %v334_v20 = vmax.f32 %v307_v17, 0.0  ;;  %v336_v21 = vmax.f32 %v313_v18, 0.0  ;;  %v316_v22 = vpop.f32.mrb[2].mxu1  ;;  %v410_v14 = vunpack.c.l.s4 %v503_v13  ;;  %v413_v18 = vshrl.u32 %v412_v15, 7 }
 0x1c9   :  { %v368_v23 = vmul.f32 %v346_v9, %v333_v3  ;;  %v370_v24 = vmul.f32 %v351_v16, %v335_v19  ;;  %v317_v25 = vadd.f32 %v316_v22, %v210_v7  ;;  %v318_v26 = vpop.f32.mrb[3].mxu1  ;;  %vm426_vm2 = vcmp.lt.s32.totalorder %v412_v15, 256 }
 0x1ca   :  { %v369_v28 = vmul.f32 %v346_v9, %v334_v20  ;;  %v371_v29 = vmul.f32 %v351_v16, %v336_v21  ;;  %v319_v30 = vadd.f32 %v318_v26, %v210_v7  ;;  %v411_v17 = vunpack.c.0.s8 %v410_v14 }
 0x1cb   :  { %v378_v31 = vadd.f32 %v370_v24, %v368_v23  ;;  %v337_v32 = vmax.f32 %v317_v25, 0.0 }
 0x1cc   :  { %v388_v34 = vadd.f32 %v371_v29, %v369_v28  ;;  %v338_v35 = vmax.f32 %v319_v30, 0.0  ;;  %v322_v36 = vpop.f32.mrb[4].mxu1  ;;  %v414_v23 = vsub.s32 %v411_v17, %v413_v18 }
 0x1cd   :  { %v372_v37 = vmul.f32 %v356_v33, %v337_v32  ;;  %v323_v38 = vadd.f32 %v322_v36, %v215_v8  ;;  %v324_v39 = vpop.f32.mrb[5].mxu1 }
 0x1ce   :  { %v373_v40 = vmul.f32 %v356_v33, %v338_v35  ;;  %v325_v41 = vadd.f32 %v324_v39, %v215_v8 }
 0x1cf   :  { %v379_v42 = vadd.f32 %v378_v31, %v372_v37  ;;  %v339_v43 = vmax.f32 %v323_v38, 0.0 }
 0x1d0   :  { %v389_v45 = vadd.f32 %v388_v34, %v373_v40  ;;  %v340_v46 = vmax.f32 %v325_v41, 0.0  ;;  %v328_v47 = vpop.f32.mrb[6].mxu1 }
 0x1d1   :  { %v374_v48 = vmul.f32 %v361_v44, %v339_v43  ;;  %v329_v49 = vadd.f32 %v328_v47, %v220_v27  ;;  %v330_v50 = vpop.f32.mrb[7].mxu1 }
 0x1d2   :  { %v375_v51 = vmul.f32 %v361_v44, %v340_v46  ;;  %v331_v52 = vadd.f32 %v330_v50, %v220_v27 }
 0x1d3   :  { %v380_v53 = vadd.f32 %v379_v42, %v374_v48  ;;  %v341_v54 = vmax.f32 %v329_v49, 0.0 }
 0x1d4   :  { %v390_v56 = vadd.f32 %v389_v45, %v375_v51  ;;  %v342_v57 = vmax.f32 %v331_v52, 0.0 }
 0x1d5   :  { %v376_v58 = vmul.f32 %v366_v55, %v341_v54 }
 0x1d6   :  { %v377_v59 = vmul.f32 %v366_v55, %v342_v57 }
 0x1d7   :  { %v381_v60 = vadd.f32 %v380_v53, %v376_v58 }
 0x1d8   :  { %v391_v61 = vadd.f32 %v390_v56, %v377_v59 }
 0x1d9   :  { %v382_v62 = vrot.slane %v381_v60, 4 }
 0x1da   :  { %v392_v63 = vrot.slane %v391_v61, 4 }
 0x1db   :  { %v383_v0 = vadd.f32 %v382_v62, %v381_v60 }
 0x1dc   :  { %v393_v1 = vadd.f32 %v392_v63, %v391_v61 }
 0x1dd   :  { %v384_v2 = vrot.slane %v383_v0, 2 }
 0x1de   :  { %v394_v4 = vrot.slane %v393_v1, 2 }
 0x1df   :  { %v385_v5 = vadd.f32 %v384_v2, %v383_v0 }
 0x1e0   :  { %v395_v6 = vadd.f32 %v394_v4, %v393_v1 }
 0x1e1   :  { %v386_v7 = vrot.slane %v385_v5, 1 }
 0x1e2   :  { %v396_v8 = vrot.slane %v395_v6, 1 }
 0x1e3   :  { %v387_v9 = vadd.f32 %v386_v7, %v385_v5 }
 0x1e4   :  { %v397_v10 = vadd.f32 %v396_v8, %v395_v6 }
 0x1e5   :  { %v398_v11 = vmul.f32 0.5, %v387_v9 }
 0x1e6   :  { %v399_v12 = vmul.f32 0.5, %v397_v10 }
 0x1e7   :  { %473 = vtanh.f32 %v398_v11 }
 0x1e8   :  { %475 = vtanh.f32 %v399_v12 }
 0x1f1   :  { %v474_v16 = vpop.eup %473 }
 0x1f2   :  { %v476_v3 = vpop.eup %475  ;;  %v402_v19 = vadd.f32 1.0, %v474_v16 }
 0x1f3   :  { %v403_v20 = vadd.f32 1.0, %v476_v3 }
 0x1f4   :  { %v404_v21 = vmul.f32 0.5, %v402_v19 }
 0x1f5   :  { %v405_v22 = vmul.f32 0.5, %v403_v20 }
 0x1f7   :  { %v408_v24 = vcombine.low %v404_v21, %v405_v22 }
 0x1f9   :  { %v415_v25 = vrot.slane %v408_v24, %v414_v23 }
 0x1fb   :  { %v422_v26 = vrot.slane %v415_v25, %v414_v23 }
 0x1fd   :  { %428 = vst.msk [vmem:[#allocation2] sm:$0x3] %vm426_vm2, %v422_v26 }
 0x1fe   :  { %488 = shalt.err (!%p485_p4)
}
 0x1ff   :  { %s489_s24 = scalar_lea.hbm %s654_s6, 32 }
 0x200   :  { %p490_p5 = scmp.ne.s32.totalorder %s654_s6, %s489_s24  ;;  %p493_p6 = scmp.lt.u32.totalorder %s489_s24, %s654_s6 }
 0x202   :  { %p495_p7 = pnand %p493_p6, %p490_p5 }
 0x204   :  { %498 = shalt.err (!%p495_p7)
}
 0x205   :  { %438 = dma.vmem_to_hbm [thread:$0]  %s436_s21, 32, %s654_s6, [#allocation3]  }
 0x206   :  { %499 = dma.done.wait [#allocation3], 32  }
 0x207   :  { %500 = vsyncadd [#allocation3], 4294967264 }
 0x208   :  { %442 = vsyncpa [#allocation3], 1 }

</bundles_post_ra>
